<compile_context>
chip_gen: v5e
topology: v5e:2x2
jax: 0.10.0
libtpu: 0.0.40
codegen_flags: <defaults>
</compile_context>

<pallas_src>
import math

import jax
import jax.numpy as jnp
from jax.experimental import pallas as pl
from jax.experimental.pallas import tpu as pltpu


# --------------------------------------------------------------------------- #
# Kernel
# --------------------------------------------------------------------------- #
def _periodic_kernel(x_ref, cbd_ref, out_ref):
    # x_ref:   (tile_b, Fc+1)   batch tile of one feature chunk + ones column
    # cbd_ref: (Fc+1, Fc*2N)    block-diag 2*pi*coeff with a trailing -phase row
    # out_ref: (tile_b, Fc*2N)  lane-dense flat output tile
    v = jnp.dot(x_ref[...].astype(jnp.float32), cbd_ref[...],
                preferred_element_type=jnp.float32)          # MXU
    out_ref[...] = jnp.cos(v).astype(out_ref.dtype)          # EUP/VPU + store


# --------------------------------------------------------------------------- #
# Wrapper helpers
# --------------------------------------------------------------------------- #
def _round_up(a: int, b: int) -> int:
    return pl.cdiv(a, b) * b


def _vmem_capacity_bytes() -> int:
    try:
        return int(pltpu.get_tpu_info().vmem_capacity_bytes)
    except Exception:
        return 64 * 1024 * 1024      # conservative (v7x per-TC)


def _feature_chunk(n_features: int, n: int, target_lanes: int):
    """Pick a feature-chunk size Fc so Fc*2N is ~target_lanes and % 128 == 0."""
    two_n = 2 * n
    # Fc must be a multiple of `step` so that Fc*2N is a multiple of 128
    # (required for the chunked output BlockSpec's lane dimension).
    step = 128 // math.gcd(two_n, 128)
    fc = max(step, (target_lanes // two_n) // step * step)
    if fc >= n_features:
        # Single chunk: the block covers the full flat lane dim, no 128 req.
        return n_features, 1
    return fc, pl.cdiv(n_features, fc)


def _build_coeff_table(coefficients: jax.Array, fc: int, n_chunks: int):
    """Per-chunk block-diagonal 2*pi*coeff table with the -phase row appended.

    Returns (n_chunks, fc+1, fc*2N) float32.  Cost is linear in F (no F x F
    eye broadcast).  If coefficients are frozen, cache this across calls.
    """
    F, N = coefficients.shape
    two_n = 2 * N
    lc = fc * two_n
    f_pad = fc * n_chunks

    c32 = coefficients.astype(jnp.float32)
    if f_pad != F:
        c32 = jnp.pad(c32, ((0, f_pad - F), (0, 0)))
    per_feat = jnp.concatenate([c32, c32], axis=-1) * (2.0 * math.pi)     # (F_pad, 2N)
    per_feat = per_feat.reshape(n_chunks, fc, two_n)                       # (nF, Fc, 2N)

    eye_c = jnp.eye(fc, dtype=jnp.float32)                                 # (Fc, Fc)
    # cbd[f, a_row, a_col*2N + j] = delta(a_row, a_col) * 2*pi*coeff[f*Fc+a_row, j%N]
    cbd = (eye_c[None, :, :, None] * per_feat[:, :, None, :]).reshape(n_chunks, fc, lc)

    phase = jnp.tile(
        jnp.concatenate([jnp.zeros((N,), jnp.float32),
                         jnp.full((N,), math.pi / 2.0, jnp.float32)]), fc)  # (lc,)
    cbd_aug = jnp.concatenate(
        [cbd, jnp.broadcast_to(-phase, (n_chunks, 1, lc))], axis=1)         # (nF, Fc+1, lc)
    return cbd_aug


def _prepare_x_chunks(x: jax.Array, fc: int, n_chunks: int, tile_b: int):
    """Chunk-major x with a ones column per chunk: (nF, B_pad, Fc+1)."""
    B, F = x.shape
    f_pad = fc * n_chunks
    b_pad = _round_up(B, tile_b)
    xp = jnp.pad(x, ((0, b_pad - B), (0, f_pad - F)))
    xc = xp.reshape(b_pad, n_chunks, fc).transpose(1, 0, 2)                # (nF, B_pad, Fc)
    ones = jnp.ones((n_chunks, b_pad, 1), dtype=xp.dtype)
    return jnp.concatenate([xc, ones], axis=-1), b_pad                     # (nF, B_pad, Fc+1)


# --------------------------------------------------------------------------- #
# Forward pass
# --------------------------------------------------------------------------- #
def periodic_forward(x: jax.Array,
                     coefficients: jax.Array,
                     *,
                     out_dtype=None,
                     tile_b: int | None = None,
                     target_chunk_lanes: int = 1024) -> jax.Array:
    """Pallas forward pass for Periodic: returns (B, F, 2*N)."""
    assert x.ndim == 2, "Periodic expects a 2-D input (batch, n_features)"
    B, F = x.shape
    F2, N = coefficients.shape
    assert F == F2
    two_n = 2 * N
    out_dtype = x.dtype if out_dtype is None else jnp.dtype(out_dtype)

    # ---- feature chunking (keeps coefficient table linear in F) ------------
    fc, n_chunks = _feature_chunk(F, N, target_chunk_lanes)
    f_pad = fc * n_chunks
    lc = fc * two_n                              # lanes per output block
    lane_padded = max(_round_up(lc, 128), 128)

    # ---- VMEM-aware batch-tile selection ------------------------------------
    cap = _vmem_capacity_bytes()
    out_isz = jnp.dtype(out_dtype).itemsize
    x_isz = jnp.dtype(x.dtype).itemsize
    # Bytes per batch row of kernel working set:
    #   2x double-buffered out block + f32 matmul/cos intermediate + 2x x block.
    per_row = (2 * lane_padded * out_isz
               + lane_padded * 4
               + 2 * (fc + 1) * max(x_isz, 4))
    cbd_bytes = 2 * (fc + 1) * lane_padded * 4   # double-buffered f32 coeff block

    # Per-generation output-block target (review: 2-8 MiB v5e/v6e, 1-4 MiB v7x).
    out_block_target = (2 << 20) if cap <= (64 << 20) else (4 << 20)
    if tile_b is None:
        tile_b = out_block_target // (lane_padded * out_isz)
    tile_b = max(8, (int(tile_b) // 8) * 8)
    # Guarantee >= 2 steps on the parallel batch axis (2 TensorCores on v7x).
    half_b = max(8, pl.cdiv(pl.cdiv(B, 2), 8) * 8)
    tile_b = min(tile_b, half_b)
    # Keep the whole working set comfortably inside VMEM.
    budget = min(int(0.45 * cap), 24 << 20)
    max_rows = max(8, ((budget - cbd_bytes) // per_row) // 8 * 8)
    tile_b = min(tile_b, max_rows)

    footprint = tile_b * per_row + cbd_bytes + (1 << 20)
    vmem_limit = int(min(int(0.9 * cap), max(2 * footprint, 32 << 20)))

    # ---- wrapper-side data prep (cheap, linear in F) -------------------------
    x_chunks, b_pad = _prepare_x_chunks(x, fc, n_chunks, tile_b)
    cbd_aug = _build_coeff_table(coefficients, fc, n_chunks)
    n_btiles = b_pad // tile_b

    # ---- grid & specs --------------------------------------------------------
    if n_chunks == 1:
        grid = (n_btiles,)
        x_map = lambda i: (0, i, 0)
        cbd_map = lambda i: (0, 0, 0)
        out_map = lambda i: (i, 0)
    else:
        # Feature-chunk axis outermost: the coefficient block stays resident
        # across the inner batch sweep (no refetch), outputs stream lane-dense.
        grid = (n_chunks, n_btiles)
        x_map = lambda f, i: (f, i, 0)
        cbd_map = lambda f, i: (f, 0, 0)
        out_map = lambda f, i: (i, f)

    out_flat = pl.pallas_call(
        _periodic_kernel,
        out_shape=jax.ShapeDtypeStruct((b_pad, f_pad * two_n), out_dtype),
        grid_spec=pltpu.PrefetchScalarGridSpec(
            num_scalar_prefetch=0,
            grid=grid,
            in_specs=[
                pl.BlockSpec((None, tile_b, fc + 1), x_map),   # x chunk tile
                pl.BlockSpec((None, fc + 1, lc), cbd_map),     # coeff (+ -phase row)
            ],
            out_specs=pl.BlockSpec((tile_b, lc), out_map),
        ),
        compiler_params=pltpu.CompilerParams(
            dimension_semantics=("parallel",) * len(grid),
            vmem_limit_bytes=vmem_limit,
        ),
    )(x_chunks, cbd_aug)

    # Slice off batch/feature padding; row-major reshape (free) to (B, F, 2N).
    return out_flat[:B, :F * two_n].reshape(B, F, two_n)


# --------------------------------------------------------------------------- #
# Parameter init (mirrors Periodic.__init__) and pure-JAX reference
# --------------------------------------------------------------------------- #
def make_coefficients(n_features: int, n: int, sigma: float,
                      initialization: str = "log-linear",
                      key: jax.Array | None = None) -> jax.Array:
    if initialization == "log-linear":
        coeff = sigma ** (jnp.arange(n, dtype=jnp.float32) / n)   # (N,)
        coeff = jnp.tile(coeff[None, :], (n_features, 1))         # (F, N)
    else:
        assert initialization == "normal"
        assert key is not None
        coeff = sigma * jax.random.normal(key, (n_features, n), dtype=jnp.float32)
    return coeff


def periodic_reference(x, coefficients):
    v = 2.0 * math.pi * coefficients[None] * x[..., None]
    return jnp.concatenate([jnp.cos(v), jnp.sin(v)], axis=-1)


# --------------------------------------------------------------------------- #
# Self-test
# --------------------------------------------------------------------------- #
if __name__ == "__main__":
    key = jax.random.PRNGKey(0)
    k1, k2 = jax.random.split(key)
    sigma = 0.05

    # Case 1: small F -> single feature chunk, non-divisible batch (padded
    # remainder) and a small explicit tile so the parallel batch axis has
    # several grid steps (pipelining / megacore sharding).
    B, F, N = 50, 8, 8
    x = jax.random.normal(k1, (B, F), dtype=jnp.float32)
    coeff = make_coefficients(F, N, sigma)
    out = jax.block_until_ready(periodic_forward(x, coeff, tile_b=16))
    ref = periodic_reference(x, coeff)
    assert out.shape == (B, F, 2 * N)
    assert jnp.allclose(out, ref, atol=2e-5, rtol=1e-5), "case 1 mismatch"

    # Case 2: forces the feature-chunked 2-D grid path (nF > 1) with feature
    # padding, exercising the chunk-major x layout and per-chunk coeff table.
    B2, F2, N2 = 37, 40, 8
    x2 = jax.random.normal(k2, (B2, F2), dtype=jnp.float32)
    coeff2 = make_coefficients(F2, N2, sigma)
    out2 = jax.block_until_ready(
        periodic_forward(x2, coeff2, tile_b=16, target_chunk_lanes=256))
    ref2 = periodic_reference(x2, coeff2)
    assert out2.shape == (B2, F2, 2 * N2)
    assert jnp.allclose(out2, ref2, atol=2e-5, rtol=1e-5), "case 2 mismatch"

    print("KERNEL_OK")
</pallas_src>

<mosaic_0001>
module attributes {stable_mosaic.version = 11 : i64} {
  func.func @_periodic_kernel(%arg0: i32, %arg1: memref<1x16x9xf32, #tpu.memory_space<vmem>>, %arg2: memref<1x9x128xf32, #tpu.memory_space<vmem>>, %arg3: memref<16x128xf32, #tpu.memory_space<vmem>>) attributes {dimension_semantics = [#tpu.dimension_semantics<parallel>], iteration_bounds = array<i64: 4>, scalar_prefetch = 0 : i64, scratch_operands = 0 : i64, tpu.core_type = #tpu.core_type<tc>, window_params = [{transform_indices = @transform_0, window_bounds = array<i64: 1, 16, 9>}, {pipeline_mode = #tpu.pipeline_mode<synchronous>, transform_indices = @transform_1, window_bounds = array<i64: 1, 9, 128>}, {transform_indices = @transform_2, window_bounds = array<i64: 16, 128>}]} {
    %c0 = arith.constant 0 : index
    %c0_0 = arith.constant 0 : index
    %c0_1 = arith.constant 0 : index
    %0 = vector.load %arg1[%c0, %c0_0, %c0_1] : memref<1x16x9xf32, #tpu.memory_space<vmem>>, vector<1x16x9xf32>
    %1 = vector.shape_cast %0 : vector<1x16x9xf32> to vector<16x9xf32>
    %c0_2 = arith.constant 0 : index
    %c0_3 = arith.constant 0 : index
    %c0_4 = arith.constant 0 : index
    %2 = vector.load %arg2[%c0_2, %c0_3, %c0_4] : memref<1x9x128xf32, #tpu.memory_space<vmem>>, vector<1x9x128xf32>
    %3 = vector.shape_cast %2 : vector<1x9x128xf32> to vector<9x128xf32>
    %cst = arith.constant dense<0.000000e+00> : vector<16x128xf32>
    %4 = tpu.matmul %1, %3, %cst {dimension_numbers = #tpu.dot_dimension_numbers<[1], [0], [0], [1], [0, 0, 1, 1], [], []>} : vector<16x9xf32>, vector<9x128xf32>, vector<16x128xf32> -> vector<16x128xf32>
    %5 = math.cos %4 : vector<16x128xf32>
    %c0_5 = arith.constant 0 : index
    %c0_6 = arith.constant 0 : index
    %6 = vector.load %arg3[%c0_5, %c0_6] : memref<16x128xf32, #tpu.memory_space<vmem>>, vector<16x128xf32>
    tpu.vector_store %arg3[%c0_5, %c0_6], %5 {strides = array<i32>} : memref<16x128xf32, #tpu.memory_space<vmem>>, vector<16x128xf32>,
    return
  }
  func.func @transform_0(%arg0: i32) -> (i32, i32, i32) {
    %c0_i32 = arith.constant 0 : i32
    %c0_i32_0 = arith.constant 0 : i32
    %c0_i32_1 = arith.constant 0 : i32
    return %c0_i32, %arg0, %c0_i32_0 : i32, i32, i32
  }
  func.func @transform_1(%arg0: i32) -> (i32, i32, i32) {
    %c0_i32 = arith.constant 0 : i32
    %c0_i32_0 = arith.constant 0 : i32
    %c0_i32_1 = arith.constant 0 : i32
    %c0_i32_2 = arith.constant 0 : i32
    return %c0_i32, %c0_i32_0, %c0_i32_1 : i32, i32, i32
  }
  func.func @transform_2(%arg0: i32) -> (i32, i32) {
    %c0_i32 = arith.constant 0 : i32
    %c0_i32_0 = arith.constant 0 : i32
    return %arg0, %c0_i32 : i32, i32
  }
}

</mosaic_0001>

<bundles_post_ra>
// kernel: tpu_custom_call.1
= control target key start
LH: loop header
LB: loop body
LE: loop exit
PB: predicated region body
PF: predicated region fallthrough
CT: control target
= control target key end

     0   :  { %7 = vsyncpa [#allocation3], 0  ;;  %s1016_s0 = inlined_call_operand.vmem [shape: f32[1,64,9], index: 0, kind: input, shape index: {}]   ;;  %s1017_s1 = inlined_call_operand.vmem [shape: f32[1,9,128], index: 1, kind: input, shape index: {}]   ;;  %s1018_s2 = inlined_call_operand.hbm [shape: f32[64,128], index: 2, kind: output, shape index: {}]  }
   0x1   :  { %9 = vsyncpa [#allocation3 + $0x1], 0  ;;  %s731_s9 = smov 0   ;;  %s733_s10 = smov 0  }
   0x2   :  { %s735_s11 = smov 0   ;;  %s737_s12 = smov 0  }
   0x3 LB: > { %s752_s13 = sadd.s32 4294967295, %s705_s12   ;;  %s571_s14 = sadd.s32 4294967294, %s705_s12   ;;  %s705_s12 = sphi %s737_s12, %s1028_s12   ;;  %s701_s11 = sphi %s735_s11, %s1027_s11   ;;  %s697_s10 = sphi %s733_s10, %s1026_s10   ;;  %s693_s9 = sphi %s731_s9, %s1025_s9  }
   0x4   : > { %s756_s15 = sadd.s32 1, %s705_s12   ;;  %s69_s16 = sadd.s32 1, %s701_s11 }
   0x5   : > { %s66_s17 = ssub.s32 %s705_s12, %s756_s15  ;;  %p79_p0 = scmp.ne.s32.totalorder %s701_s11, %s697_s10 }
   0x6   : > { %p67_p1 = scmp.eq.s32.totalorder %s66_s17, 0  ;;  %p80_p2 = scmp.eq.s32.totalorder %s752_s13, 3 }
   0x7   : > { %p85_p3 = scmp.ne.s32.totalorder %s697_s10, %s693_s9  ;;  %p86_p4 = scmp.eq.s32.totalorder %s571_s14, 3 }
   0x8   : > { %s767_s18 = scalar_select %p67_p1, %s701_s11, %s69_s16  }
   0x9   : > { %p769_p5 = por %p80_p2, %p79_p0  ;;  %p773_p6 = por %p86_p4, %p85_p3 }
   0xa   : > { %p574_p7 = scmp.ge.s32.totalorder %s705_s12, 1  ;;  %p116_p8 = scmp.lt.s32.totalorder %s705_s12, 5 }
   0xc   : > { %p117_p9 = pnand %p574_p7, %p116_p8 }
   0xd   : > { %s576_s25 = sshll.u32 (!%p117_p9), %s752_s13, 1  ;;  %s135_s30 = sand.u32 (!%p117_p9), 1, %s697_s10  }
   0xe   : > { %120 = sbr.rel (%p117_p9) target bundleno = 266 (0x10a), region = 28  ;;  %p139_p10 = scmp.lt.s32.totalorder (!%p117_p9), %s576_s25, 7 }
   0xf   : > { %s575_s3 = sshll.u32 (!%p117_p9), %s135_s30, 4  ;;  %s592_s5 = sshll.u32 (!%p117_p9), %s752_s13, 4 }
  0x10   : > { %s971_s4 = scalar_lea.vmem (!%p117_p9), [#allocation2], %s575_s3  ;;  %s505_s8 = scalar_lea.hbm (!%p117_p9), %s1018_s2, %s592_s5 }
  0x11   : > { %s506_s14 = sshll.u32 (!%p117_p9), %s971_s4, 4  ;;  %s508_s16 = sshll.u32 (!%p117_p9), %s505_s8, 4  ;;  %s507_s14 = int_to_ptr.vmem [resolvable:$true] %s506_s14  ;;  %s509_s16 = int_to_ptr.hbm [resolvable:$true] %s508_s16 }
  0x12   : > { %s494_s13 = scalar_lea.sflag (!%p117_p9), [#allocation3], %s135_s30  ;;  %s657_s17 = sshra.s32 (!%p117_p9), %s509_s16, 4  ;;  %s658_s17 = int_to_ptr.hbm [resolvable:$true] %s657_s17 }
  0x13   : > { %v148_v0 = vld [vmem:[%s1017_s1 + $0x8] sm:$0x1]  ;;  %vm156_vm0 = vcmask 1040384   ;;  %v147_v1 = vld [vmem:[%s1017_s1] sm:$0xff]  ;;  %s1030_s25 = smov (!%p139_p10, %s576_s25), 7  ;;  %vm149_vm1 = vcmask 72704   ;;  %p664_p0 = scmp.lt.s32.totalorder %s658_s17, %s1018_s2 }
  0x14   : > { %578 = vmatpush.msk.msra.mxu0 %vm156_vm0, %v148_v0  ;;  %593 = vmatpush.msk.msra.mxu1 %vm156_vm0, %v148_v0  ;;  %s577_s26 = sshll.u32 %s1030_s25, 3  ;;  %v707_v29 = vmov 683565275   ;;  %v708_v31 = vmov 2475754826   ;;  %s659_s21 = scalar_lea.hbm %s658_s17, 16 }
  0x15   : > { %s142_s29 = scalar_lea.vmem %s1016_s0, %s577_s26  ;;  %v709_v35 = vmov 2131351028   ;;  %v710_v38 = vmov 2102212464   ;;  %v711_v41 = vmov 920167782   ;;  %p660_p11 = scmp.ne.s32.totalorder %s658_s17, %s659_s21 }
  0x16   : > { %175 = vmatpush.msra.mxu0 %v147_v1  ;;  %594 = vmatpush.msra.mxu1 %v147_v1  ;;  %v145_v2 = vld [vmem:[%s142_s29] sm:$0xff]  ;;  %v146_v3 = vld [vmem:[%s142_s29 + $0x8] sm:$0xff]  ;;  %v712_v44 = vmov 1326507024   ;;  %s663_s24 = scalar_lea.hbm %s1018_s2, 64 }
  0x17   : > { %579 = vmatmul.msk.f32.vlgmr.msra.gmra.mxu0 %vm149_vm1, %v145_v2  ;;  %580 = vmatmul.msk.f32.vlgmr.msra.gmra.mxu1 %vm149_vm1, %v146_v3  ;;  %p661_p12 = pnand %p660_p11, %p769_p5  ;;  %p665_p1 = scmp.lt.s32.totalorder %s663_s24, %s659_s21 }
  0x19   : > { %p662_p13 = pneg %p661_p12  ;;  %p666_p2 = por %p665_p1, %p664_p0 }
  0x1b   : > { %p667_p3 = pnand %p666_p2, %p662_p13 }
  0x94   : > { %v789_v4 = vpop.f32.mrf.mxu0  ;;  %v791_v5 = vpop.f32.mrf.mxu1 }
  0x95   : > { %v183_v6 = vand.u32 2147483647, %v789_v4  ;;  %v186_v7 = vand.u32 2139095040, %v789_v4  ;;  %v337_v8 = vand.u32 2147483647, %v791_v5  ;;  %v340_v9 = vand.u32 2139095040, %v791_v5 }
  0x97   : > { %v187_v10 = vshrl.u32 %v186_v7, 23  ;;  %v190_v11 = vand.u32 8388607, %v183_v6  ;;  %v341_v12 = vshrl.u32 %v340_v9, 23  ;;  %v344_v15 = vand.u32 8388607, %v337_v8 }
  0x99   : > { %v581_v13 = vadd.s32 4294967169, %v187_v10  ;;  %v191_v14 = vor.u32 8388608, %v190_v11  ;;  %v584_v16 = vadd.s32 4294967169, %v341_v12  ;;  %v345_v20 = vor.u32 8388608, %v344_v15 }
  0x9b   : > { %v193_v17 = vadd.s32 1, %v581_v13  ;;  %v347_v18 = vadd.s32 1, %v584_v16  ;;  %v801_v19 = vshll.u32 %v191_v14, 8  ;;  %v808_v27 = vshll.u32 %v345_v20, 8 }
  0x9d   : > { %vm194_vm2 = vcmp.gt.s32.totalorder %v193_v17, 0  ;;  %vm348_vm3 = vcmp.gt.s32.totalorder %v347_v18, 0  ;;  %v804_v25 = vand.u32 65535, %v801_v19  ;;  %v233_v33 = vshrl.u32 %v801_v19, 16 }
  0x9e   : > { %v195_v21 = vsel %vm194_vm2, %v193_v17, 0  ;;  %v349_v23 = vsel %vm348_vm3, %v347_v18, 0 }
  0x9f   : > { %v197_v22 = vand.u32 31, %v195_v21  ;;  %v806_v26 = vand.u32 31, %v349_v23  ;;  %v810_v28 = vshrl.u32 %v195_v21, 5  ;;  %v848_v12 = vshrl.u32 %v349_v23, 5 }
  0xa1   : > { %v198_v24 = vsub.s32 32, %v197_v22  ;;  %v200_v30 = vshll.u32 %v707_v29, %v197_v22  ;;  %v203_v32 = vshll.u32 %v708_v31, %v197_v22  ;;  %v206_v37 = vshll.u32 %v709_v35, %v197_v22 }
  0xa2   : > { %v209_v40 = vshll.u32 %v710_v38, %v197_v22  ;;  %v212_v43 = vshll.u32 %v711_v41, %v197_v22  ;;  %v820_v49 = vsub.s32 32, %v806_v26  ;;  %vm215_vm4 = vcmp.lt.s32.totalorder %v810_v28, 1 }
  0xa3   : > { %v201_v34 = vshrl.u32 %v708_v31, %v198_v24  ;;  %v204_v36 = vshrl.u32 %v709_v35, %v198_v24  ;;  %v207_v39 = vshrl.u32 %v710_v38, %v198_v24  ;;  %v210_v42 = vshrl.u32 %v711_v41, %v198_v24 }
  0xa4   : > { %v213_v45 = vshrl.u32 %v712_v44, %v198_v24  ;;  %vm216_vm5 = vcmp.lt.s32.totalorder %v810_v28, 2  ;;  %v199_v52 = vshrl.u32 %v707_v29, %v198_v24  ;;  %vm218_vm6 = vcmp.lt.s32.totalorder %v810_v28, 4 }
  0xa5   : > { %v202_v46 = vor.u32 %v201_v34, %v200_v30  ;;  %v205_v47 = vor.u32 %v204_v36, %v203_v32  ;;  %v208_v48 = vor.u32 %v207_v39, %v206_v37  ;;  %v211_v50 = vor.u32 %v210_v42, %v209_v40 }
  0xa6   : > { %v214_v51 = vor.u32 %v213_v45, %v212_v43  ;;  %vm217_vm7 = vcmp.lt.s32.totalorder %v810_v28, 3  ;;  %v354_v57 = vshll.u32 %v707_v29, %v806_v26  ;;  %v355_v61 = vshrl.u32 %v708_v31, %v820_v49 }
  0xa7   : > { %v223_v53 = vsel %vm215_vm4, %v202_v46, %v205_v47  ;;  %v227_v54 = vsel %vm215_vm4, %v205_v47, %v208_v48  ;;  %v224_v55 = vsel %vm218_vm6, %v211_v50, 920167782  ;;  %v220_v58 = vsel %vm218_vm6, %v208_v48, 2102212464 }
  0xa8   : > { %v228_v56 = vsel %vm218_vm6, %v214_v51, 1326507024  ;;  %v225_v59 = vsel %vm217_vm7, %v208_v48, %v224_v55  ;;  %v357_v0 = vshll.u32 %v708_v31, %v806_v26  ;;  %v358_v1 = vshrl.u32 %v709_v35, %v820_v49 }
  0xa9   : > { %v229_v60 = vsel %vm217_vm7, %v211_v50, %v228_v56  ;;  %v226_v62 = vsel %vm216_vm5, %v223_v53, %v225_v59  ;;  %v219_v10 = vsel %vm215_vm4, %v199_v52, %v202_v46  ;;  %v221_v11 = vsel %vm217_vm7, %v205_v47, %v220_v58 }
  0xaa   : > { %v230_v63 = vsel %vm216_vm5, %v227_v54, %v229_v60  ;;  %v256_v7 = vand.u32 65535, %v226_v62  ;;  %v257_v9 = vshrl.u32 %v226_v62, 16  ;;  %v850_v13 = vor.u32 %v355_v61, %v354_v57 }
  0xab   : > { %v234_v2 = vand.u32 65535, %v230_v63  ;;  %v235_v3 = vshrl.u32 %v230_v63, 16  ;;  %v853_v16 = vor.u32 %v358_v1, %v357_v0  ;;  %v361_v17 = vshrl.u32 %v710_v38, %v820_v49 }
  0xac   : > { %v259_v20 = vmul.u32 %v257_v9, %v804_v25  ;;  %v260_v21 = vmul.u32 %v256_v7, %v233_v33  ;;  %v360_v22 = vshll.u32 %v709_v35, %v806_v26  ;;  %v258_v30 = vmul.u32 %v256_v7, %v804_v25 }
  0xad   : > { %v237_v14 = vmul.u32 %v235_v3, %v804_v25  ;;  %v238_v15 = vmul.u32 %v234_v2, %v233_v33  ;;  %v236_v18 = vmul.u32 %v234_v2, %v804_v25  ;;  %v239_v24 = vmul.u32 %v235_v3, %v233_v33 }
  0xae   : > { %v261_v31 = vmul.u32 %v257_v9, %v233_v33  ;;  %v262_v37 = vshll.u32 %v259_v20, 16  ;;  %v264_v40 = vshll.u32 %v260_v21, 16  ;;  %v861_v42 = vor.u32 %v361_v17, %v360_v22 }
  0xaf   : > { %v240_v23 = vshll.u32 %v237_v14, 16  ;;  %v241_v32 = vshrl.u32 %v237_v14, 16  ;;  %v242_v34 = vshll.u32 %v238_v15, 16  ;;  %v243_v36 = vshrl.u32 %v238_v15, 16 }
  0xb0   : > { %v713_v43 = vmov 0   ;;  %vm266_vm9 = vc.u32 %v258_v30, %v262_v37  ;;  %v268_v46 = vadd.s32 %v262_v37, %v258_v30  ;;  %v364_v35 = vshrl.u32 %v711_v41, %v820_v49 }
  0xb1   : > { %vm244_vm8 = vc.u32 %v236_v18, %v240_v23  ;;  %v246_v39 = vadd.s32 %v240_v23, %v236_v18  ;;  %v267_v25 = vsel %vm266_vm9, 1, %v713_v43  ;;  %v363_v33 = vshll.u32 %v710_v38, %v806_v26 }
  0xb2   : > { %v245_v45 = vsel %vm244_vm8, 1, %v713_v43  ;;  %v269_v50 = vadd.s32 %v267_v25, %v261_v31  ;;  %vm270_vm11 = vc.u32 %v268_v46, %v264_v40  ;;  %v366_v51 = vshll.u32 %v711_v41, %v806_v26 }
  0xb3   : > { %v247_v47 = vadd.s32 %v245_v45, %v239_v24  ;;  %vm248_vm10 = vc.u32 %v246_v39, %v242_v34  ;;  %v271_v53 = vsel %vm270_vm11, 1, %v713_v43  ;;  %v365_v54 = vor.u32 %v364_v35, %v363_v33 }
  0xb4   : > { %v249_v48 = vsel %vm248_vm10, 1, %v713_v43  ;;  %v367_v55 = vshrl.u32 %v712_v44, %v820_v49  ;;  %v263_v56 = vshrl.u32 %v259_v20, 16  ;;  %v265_v57 = vshrl.u32 %v260_v21, 16 }
  0xb5   : > { %v251_v52 = vadd.s32 %v249_v48, %v247_v47  ;;  %v875_v58 = vadd.s32 %v268_v46, %v264_v40  ;;  %v273_v59 = vadd.s32 %v271_v53, %v269_v50  ;;  %vm369_vm12 = vcmp.lt.s32.totalorder %v848_v12, 1 }
  0xb6   : > { %v368_v60 = vor.u32 %v367_v55, %v366_v51  ;;  %vm372_vm13 = vcmp.lt.s32.totalorder %v848_v12, 4  ;;  %vm371_vm14 = vcmp.lt.s32.totalorder %v848_v12, 3  ;;  %v377_v26 = vsel %vm369_vm12, %v850_v13, %v853_v16 }
  0xb7   : > { %v252_v38 = vadd.s32 %v251_v52, %v241_v32  ;;  %v274_v61 = vadd.s32 %v273_v59, %v263_v56  ;;  %v378_v41 = vsel %vm372_vm13, %v365_v54, 920167782  ;;  %vm370_vm15 = vcmp.lt.s32.totalorder %v848_v12, 2 }
  0xb8   : > { %v379_v62 = vsel %vm371_vm14, %v861_v42, %v378_v41  ;;  %v381_v63 = vsel %vm369_vm12, %v853_v16, %v861_v42  ;;  %v222_v0 = vsel %vm216_vm5, %v219_v10, %v221_v11  ;;  %v382_v3 = vsel %vm372_vm13, %v368_v60, 1326507024 }
  0xb9   : > { %v886_v44 = vadd.s32 %v252_v38, %v243_v36  ;;  %v275_v1 = vadd.s32 %v274_v61, %v265_v57  ;;  %v380_v2 = vsel %vm370_vm15, %v377_v26, %v379_v62  ;;  %v383_v7 = vsel %vm371_vm14, %v365_v54, %v382_v3 }
  0xba   : > { %v386_v9 = vand.u32 65535, %v808_v27  ;;  %v410_v14 = vand.u32 65535, %v380_v2  ;;  %v384_v28 = vsel %vm370_vm15, %v381_v63, %v383_v7  ;;  %v387_v10 = vshrl.u32 %v808_v27, 16 }
  0xbb   : > { %vm278_vm0 = vc.u32 %v886_v44, %v875_v58  ;;  %v279_v15 = vadd.s32 1, %v275_v1  ;;  %v411_v11 = vshrl.u32 %v380_v2, 16  ;;  %v276_v17 = vmul.u32 %v801_v19, %v222_v0 }
  0xbc   : > { %v388_v18 = vand.u32 65535, %v384_v28  ;;  %v389_v20 = vshrl.u32 %v384_v28, 16  ;;  %v414_v24 = vmul.u32 %v410_v14, %v387_v10  ;;  %v412_v32 = vmul.u32 %v410_v14, %v386_v9 }
  0xbd   : > { %v280_v21 = vsel %vm278_vm0, %v279_v15, %v275_v1  ;;  %v413_v22 = vmul.u32 %v411_v11, %v386_v9  ;;  %v415_v34 = vmul.u32 %v411_v11, %v387_v10  ;;  %v374_v52 = vsel %vm372_vm13, %v861_v42, 2102212464 }
  0xbe   : > { %v281_v23 = vadd.s32 %v280_v21, %v276_v17  ;;  %v391_v30 = vmul.u32 %v389_v20, %v386_v9  ;;  %v392_v31 = vmul.u32 %v388_v18, %v387_v10  ;;  %v390_v39 = vmul.u32 %v388_v18, %v386_v9 }
  0xbf   : > { %v416_v36 = vshll.u32 %v413_v22, 16  ;;  %v393_v40 = vmul.u32 %v389_v20, %v387_v10  ;;  %v418_v35 = vshll.u32 %v414_v24, 16  ;;  %v353_v54 = vshrl.u32 %v707_v29, %v820_v49 }
  0xc0   : > { %v282_v37 = vadd.s32 536870912, %v281_v23  ;;  %v394_v45 = vshll.u32 %v391_v30, 16  ;;  %v396_v46 = vshll.u32 %v392_v31, 16  ;;  %v395_v59 = vshrl.u32 %v391_v30, 16 }
  0xc1   : > { %vm420_vm1 = vc.u32 %v412_v32, %v416_v36  ;;  %v422_v47 = vadd.s32 %v416_v36, %v412_v32  ;;  %v373_v61 = vsel %vm369_vm12, %v353_v54, %v850_v13  ;;  %v375_v42 = vsel %vm371_vm14, %v853_v16, %v374_v52 }
  0xc2   : > { %v911_v19 = vshrl.u32 %v282_v37, 30  ;;  %vm398_vm2 = vc.u32 %v390_v39, %v394_v45  ;;  %v400_v25 = vadd.s32 %v394_v45, %v390_v39  ;;  %v421_v33 = vsel %vm420_vm1, 1, %v713_v43 }
  0xc3   : > { %v399_v48 = vsel %vm398_vm2, 1, %v713_v43  ;;  %v423_v50 = vadd.s32 %v421_v33, %v415_v34  ;;  %vm424_vm3 = vc.u32 %v422_v47, %v418_v35  ;;  %v417_v26 = vshrl.u32 %v413_v22, 16 }
  0xc4   : > { %v284_v51 = vshll.u32 %v911_v19, 30  ;;  %v401_v53 = vadd.s32 %v399_v48, %v393_v40  ;;  %vm402_vm4 = vc.u32 %v400_v25, %v396_v46  ;;  %v425_v56 = vsel %vm424_vm3, 1, %v713_v43 }
  0xc5   : > { %v403_v55 = vsel %vm402_vm4, 1, %v713_v43  ;;  %v427_v60 = vadd.s32 %v425_v56, %v423_v50  ;;  %v397_v49 = vshrl.u32 %v392_v31, 16  ;;  %v419_v62 = vshrl.u32 %v414_v24, 16 }
  0xc6   : > { %v285_v57 = vsub.s32 %v281_v23, %v284_v51  ;;  %v405_v38 = vadd.s32 %v403_v55, %v401_v53  ;;  %v376_v0 = vsel %vm370_vm15, %v373_v61, %v375_v42  ;;  %v426_v3 = vadd.s32 %v422_v47, %v418_v35 }
  0xc7   : > { %v428_v63 = vadd.s32 %v427_v60, %v417_v26  ;;  %v430_v16 = vmul.u32 %v808_v27, %v376_v0  ;;  %v277_v10 = vadd.s32 %v875_v58, %v886_v44  ;;  %vm185_vm9 = vcmp.lt.s32.totalorder %v789_v4, 0 }
  0xc8   : > { %vm286_vm5 = vcmp.lt.s32.totalorder %v285_v57, 0  ;;  %v287_v41 = vsub.s32 0, %v285_v57  ;;  %v406_v29 = vadd.s32 %v405_v38, %v395_v59  ;;  %vm940_vm10 = vcmp.le.f32.partialorder %v183_v6, 0.7853982 }
  0xc9   : > { %v429_v7 = vadd.s32 %v428_v63, %v419_v62  ;;  %v307_v6 = vsub.s32 4, %v911_v19  ;;  %vm339_vm12 = vcmp.lt.s32.totalorder %v791_v5, 0  ;;  %vm961_vm15 = vcmp.le.f32.partialorder %v337_v8, 0.7853982 }
  0xca   : > { %v288_v43 = vsel %vm286_vm5, %v287_v41, %v285_v57  ;;  %v407_v2 = vadd.s32 %v406_v29, %v397_v49  ;;  %vm326_vm1 = vweird.f32 %v789_v4  ;;  %vm480_vm5 = vweird.f32 %v791_v5 }
  0xcb   : > { %v289_v1 = vclz %v288_v43  ;;  %v433_v9 = vadd.s32 1, %v429_v7  ;;  %v308_v60 = vsel %vm185_vm9, %v307_v6, %v911_v19 }
  0xcc   : > { %vm432_vm6 = vc.u32 %v407_v2, %v426_v3  ;;  %v431_v50 = vadd.s32 %v426_v3, %v407_v2  ;;  %v310_v49 = vsel %vm940_vm10, 0, %v308_v60 }
  0xcd   : > { %v582_v13 = vadd.s32 4294967294, %v289_v1  ;;  %v434_v14 = vsel %vm432_vm6, %v433_v9, %v429_v7  ;;  %v327_v3 = vand.u32 3, %v310_v49 }
  0xce   : > { %v435_v28 = vadd.s32 %v434_v14, %v430_v16 }
  0xcf   : > { %vm583_vm7 = vcmp.lt.s32.totalorder %v582_v13, 0  ;;  %vm329_vm13 = vcmp.eq.s32.totalorder %v327_v3, 0  ;;  %vm332_vm14 = vcmp.eq.s32.totalorder %v327_v3, 2  ;;  %vm328_vm0 = vcmp.lt.s32.totalorder %v327_v3, 2 }
  0xd0   : > { %v292_v15 = vsel %vm583_vm7, 0, %v582_v13  ;;  %v436_v12 = vadd.s32 536870912, %v435_v28 }
  0xd1   : > { %v293_v11 = vsub.s32 32, %v292_v15  ;;  %v297_v17 = vsub.s32 4294967266, %v292_v15  ;;  %v294_v18 = vshll.u32 %v285_v57, %v292_v15 }
  0xd2   : > { %v934_v22 = vshrl.u32 %v436_v12, 30 }
  0xd3   : > { %v295_v20 = vshrl.u32 %v277_v10, %v293_v11  ;;  %v298_v21 = vadd.s32 127, %v297_v17 }
  0xd4   : > { %v438_v30 = vshll.u32 %v934_v22, 30 }
  0xd5   : > { %v296_v24 = vor.u32 %v295_v20, %v294_v18  ;;  %v299_v23 = vshll.u32 %v298_v21, 23  ;;  %v461_v21 = vsub.s32 4, %v934_v22 }
  0xd6   : > { %v439_v31 = vsub.s32 %v435_v28, %v438_v30 }
  0xd7   : > { %v300_v27 = vor.u32 4788187, %v299_v23  ;;  %v303_v34 = vcvt.s32.f32 %v296_v24 }
  0xd8   : > { %vm440_vm8 = vcmp.lt.s32.totalorder %v439_v31, 0  ;;  %v441_v36 = vsub.s32 0, %v439_v31 }
  0xd9   : > { %v301_v32 = vand.u32 2147483647, %v300_v27 }
  0xda   : > { %v442_v58 = vsel %vm440_vm8, %v441_v36, %v439_v31 }
  0xdb   : > { %v304_v37 = vmul.f32 %v303_v34, %v301_v32  ;;  %v443_v39 = vclz %v442_v58 }
  0xdd   : > { %v305_v44 = vxor.u32 2147483648, %v304_v37  ;;  %v585_v46 = vadd.s32 4294967294, %v443_v39 }
  0xdf   : > { %v306_v45 = vsel %vm185_vm9, %v305_v44, %v304_v37  ;;  %vm586_vm11 = vcmp.lt.s32.totalorder %v585_v46, 0 }
  0xe0   : > { %v309_v35 = vsel %vm940_vm10, %v789_v4, %v306_v45  ;;  %v446_v25 = vsel %vm586_vm11, 0, %v585_v46  ;;  %v462_v4 = vsel %vm339_vm12, %v461_v21, %v934_v22 }
  0xe1   : > { %v311_v47 = vmul.f32 %v309_v35, %v309_v35  ;;  %v447_v51 = vsub.s32 32, %v446_v25  ;;  %v451_v52 = vsub.s32 4294967266, %v446_v25  ;;  %v448_v56 = vshll.u32 %v439_v31, %v446_v25 }
  0xe2   : > { %v464_v34 = vsel %vm961_vm15, 0, %v462_v4 }
  0xe3   : > { %v312_v33 = vmul.f32 -0.001358992, %v311_v47  ;;  %v319_v48 = vmul.f32 -0.00019511016, %v311_v47  ;;  %v449_v55 = vshrl.u32 %v431_v50, %v447_v51  ;;  %v452_v57 = vadd.s32 127, %v451_v52 }
  0xe4   : > { %v481_v39 = vand.u32 3, %v464_v34 }
  0xe5   : > { %v313_v53 = vadd.f32 0.041655596, %v312_v33  ;;  %v320_v54 = vadd.f32 0.008332121, %v319_v48  ;;  %v450_v61 = vor.u32 %v449_v55, %v448_v56  ;;  %v453_v42 = vshll.u32 %v452_v57, 23 }
  0xe6   : > { %vm483_vm2 = vcmp.eq.s32.totalorder %v481_v39, 0  ;;  %vm486_vm3 = vcmp.eq.s32.totalorder %v481_v39, 2  ;;  %vm482_vm4 = vcmp.lt.s32.totalorder %v481_v39, 2 }
  0xe7   : > { %v314_v59 = vmul.f32 %v313_v53, %v311_v47  ;;  %v321_v38 = vmul.f32 %v320_v54, %v311_v47  ;;  %v454_v29 = vor.u32 4788187, %v453_v42  ;;  %v457_v0 = vcvt.s32.f32 %v450_v61 }
  0xe9   : > { %v315_v26 = vadd.f32 -0.4999988, %v314_v59  ;;  %v322_v41 = vadd.f32 -0.16666654, %v321_v38  ;;  %v455_v43 = vand.u32 2147483647, %v454_v29 }
  0xeb   : > { %v316_v62 = vmul.f32 %v315_v26, %v311_v47  ;;  %v323_v63 = vmul.f32 %v322_v41, %v311_v47  ;;  %v458_v7 = vmul.f32 %v457_v0, %v455_v43 }
  0xed   : > { %v317_v1 = vadd.f32 1.0, %v316_v62  ;;  %v324_v2 = vadd.f32 1.0, %v323_v63  ;;  %v459_v9 = vxor.u32 2147483648, %v458_v7 }
  0xef   : > { %v325_v13 = vmul.f32 %v324_v2, %v309_v35  ;;  %v333_v19 = vxor.u32 2147483648, %v317_v1  ;;  %v460_v15 = vsel %vm339_vm12, %v459_v9, %v458_v7 }
  0xf0   : > { %v463_v11 = vsel %vm961_vm15, %v791_v5, %v460_v15 }
  0xf1   : > { %v330_v16 = vxor.u32 2147483648, %v325_v13  ;;  %v334_v10 = vsel %vm332_vm14, %v333_v19, %v325_v13  ;;  %v465_v12 = vmul.f32 %v463_v11, %v463_v11 }
  0xf3   : > { %v331_v28 = vsel %vm329_vm13, %v317_v1, %v330_v16  ;;  %v466_v8 = vmul.f32 -0.001358992, %v465_v12  ;;  %v473_v20 = vmul.f32 -0.00019511016, %v465_v12 }
  0xf4   : > { %v335_v17 = vsel %vm328_vm0, %v331_v28, %v334_v10 }
  0xf5   : > { %v336_v18 = vsel %vm326_vm1, nan, %v335_v17  ;;  %v467_v24 = vadd.f32 0.041655596, %v466_v8  ;;  %v474_v23 = vadd.f32 0.008332121, %v473_v20 }
  0xf6   : > { %491 = vst [vmem:[%s971_s4] sm:$0xff] %v336_v18 }
  0xf7   : > { %v468_v30 = vmul.f32 %v467_v24, %v465_v12  ;;  %v475_v27 = vmul.f32 %v474_v23, %v465_v12 }
  0xf9   : > { %v469_v31 = vadd.f32 -0.4999988, %v468_v30  ;;  %v476_v32 = vadd.f32 -0.16666654, %v475_v27 }
  0xfb   : > { %v470_v36 = vmul.f32 %v469_v31, %v465_v12  ;;  %v477_v37 = vmul.f32 %v476_v32, %v465_v12 }
  0xfd   : > { %v471_v58 = vadd.f32 1.0, %v470_v36  ;;  %v478_v44 = vadd.f32 1.0, %v477_v37 }
  0xff   : > { %v479_v40 = vmul.f32 %v478_v44, %v463_v11  ;;  %v487_v45 = vxor.u32 2147483648, %v471_v58 }
 0x101   : > { %v484_v22 = vxor.u32 2147483648, %v479_v40  ;;  %v488_v35 = vsel %vm486_vm3, %v487_v45, %v479_v40 }
 0x103   : > { %v485_v46 = vsel %vm483_vm2, %v471_v58, %v484_v22 }
 0x104   : > { %v489_v47 = vsel %vm482_vm4, %v485_v46, %v488_v35 }
 0x105   : > { %v490_v25 = vsel %vm480_vm5, nan, %v489_v47 }
 0x106   : > { %492 = vst [vmem:[%s971_s4 + $0x8] sm:$0xff] %v490_v25 }
 0x107   : > { %670 = shalt.err (!%p667_p3)
}
 0x108   : > { %s714_s27 = smov 128   ;;  %s715_s28 = smov 8  }
 0x109   : > { %595 = dma.vmem_to_hbm [thread:$0]  (%p769_p5), %s507_s14, 256, %s509_s16, %s494_s13, %s714_s27, %s714_s27, %s715_s28  }
 0x10a PF: > { %p601_p4 = scmp.ge.s32.totalorder %s705_s12, 2  ;;  %s523_s29 = sand.u32 1, %s693_s9  }
 0x10b   : > { %s524_s30 = scalar_lea.sflag [#allocation3], %s523_s29 }
 0x10c   : > { %p598_p7 = pnand %p601_p4, %p773_p6 }
 0x10e   : > { %p599_p8 = pneg %p598_p7 }
 0x110   : > { %688 = dma.done.wait (%p599_p8), %s524_s30, 256  }
 0x111   : > { %690 = vsyncadd (%p599_p8), %s524_s30, 4294967040  ;;  %p12_p9 = scmp.ge.s32.totalorder %s756_s15, 6   ;;  %s1025_s9 = smov %s697_s10 }
 0x112   : > { %s1026_s10 = smov %s701_s11  ;;  %s1027_s11 = smov %s767_s18 }
 0x113   : > { %s1028_s12 = smov %s756_s15  ;;  %14 = sbr.rel (!%p12_p9) target bundleno = 3 (0x3), region = 63 }
 0x118   :  { %530 = vsyncpa [#allocation3], 1 }
 0x119   :  { %532 = vsyncpa [#allocation3 + $0x1], 1 }

</bundles_post_ra>
